<compile_context>
chip_gen: v5e
topology: v5e:2x2
jax: 0.10.0
libtpu: 0.0.40
codegen_flags: <defaults>
</compile_context>

<pallas_src>
import jax
import jax.numpy as jnp
from jax import lax
from jax.experimental import pallas as pl
from jax.experimental.pallas import tpu as pltpu


def cls_head_kernel(img_ref, qg_ref, w_ref, b_ref, out_ref):
    # img_ref: (1, tN, H_pad)   qg_ref: (1, 3, P_pad, D_pad)
    # w_ref:   (H_pad, D_pad)   b_ref:  (1, D_pad)
    # out_ref: (1, tN, P_pad)
    img = img_ref[0]                       # (tN, H_pad)
    w = w_ref[...]                         # (H_pad, D_pad)
    b = b_ref[...]                         # (1, D_pad)

    # dense0 on the MXU
    ice = jnp.dot(img, w, preferred_element_type=jnp.float32) + b    # (tN, D_pad)

    # image_class_embeds / (||.||_2 + 1e-6)   (eps added to the norm BEFORE dividing)
    inorm = jnp.sqrt(jnp.sum(ice * ice, axis=-1, keepdims=True))
    ice = ice * pl.reciprocal(inorm + 1e-6)          # exact EUP reciprocal

    # Three interleaved, pre-normalized query groups; contract the shared last
    # dim directly (NT matmul, no physical transpose).
    qg = qg_ref[0]                          # (3, P_pad, D_pad)
    dn = (((1,), (1,)), ((), ()))
    s0 = lax.dot_general(ice, qg[0], dn, preferred_element_type=jnp.float32)
    s1 = lax.dot_general(ice, qg[1], dn, preferred_element_type=jnp.float32)
    s2 = lax.dot_general(ice, qg[2], dn, preferred_element_type=jnp.float32)

    # MaxPool1d(k=3, s=3) over the query axis == elementwise max of the 3 groups.
    out_ref[0] = jnp.maximum(jnp.maximum(s0, s1), s2)   # single lane-dense store


def _round_up(x, m):
    return ((x + m - 1) // m) * m


def owlvit_class_head(image_embeds, query_embeds, w, b):
    """Returns (None, pred_sims) matching the PyTorch module."""
    B, N, H = image_embeds.shape
    _, Q, D = query_embeds.shape
    P = (Q - 3) // 3 + 1                   # MaxPool1d(k=3, s=3), no padding
    assert P >= 1, "need at least 3 queries for MaxPool1d(k=3, s=3)"

    # ---- wrapper-side prep (plain XLA) -------------------------------------
    # query_embeds / ||.||_2 + 1e-6   (eps AFTER the divide — reference exact)
    qnorm = jnp.sqrt(jnp.sum(query_embeds * query_embeds, axis=-1, keepdims=True))
    qn = query_embeds / qnorm + 1e-6
    qn = qn[:, : 3 * P, :]                                   # pool drops the tail
    # window p uses queries (3p, 3p+1, 3p+2)  ->  groups by offset-in-window
    qg = qn.reshape(B, P, 3, D).transpose(0, 2, 1, 3)        # (B, 3, P, D)

    # ---- pad minor dims to (8, 128)-friendly sizes (zero padding is exact) --
    H_pad = _round_up(H, 128)
    D_pad = _round_up(D, 128)
    P_pad = _round_up(P, 128)
    tN = min(512, _round_up(N, 8))
    N_pad = _round_up(N, tN)

    img_p = jnp.pad(image_embeds, ((0, 0), (0, N_pad - N), (0, H_pad - H)))
    qg_p = jnp.pad(qg, ((0, 0), (0, 0), (0, P_pad - P), (0, D_pad - D)))
    w_p = jnp.pad(w, ((0, H_pad - H), (0, D_pad - D)))
    b_p = jnp.pad(b, ((0, 0), (0, D_pad - D)))

    grid = (B, N_pad // tN)

    pooled = pl.pallas_call(
        cls_head_kernel,
        out_shape=jax.ShapeDtypeStruct((B, N_pad, P_pad), jnp.float32),
        grid_spec=pltpu.PrefetchScalarGridSpec(
            num_scalar_prefetch=0,
            grid=grid,
            in_specs=[
                pl.BlockSpec((1, tN, H_pad), lambda bi, ni: (bi, ni, 0)),
                pl.BlockSpec((1, 3, P_pad, D_pad), lambda bi, ni: (bi, 0, 0, 0)),
                pl.BlockSpec((H_pad, D_pad), lambda bi, ni: (0, 0)),
                pl.BlockSpec((1, D_pad), lambda bi, ni: (0, 0)),
            ],
            out_specs=pl.BlockSpec((1, tN, P_pad), lambda bi, ni: (bi, ni, 0)),
        ),
        compiler_params=pltpu.CompilerParams(
            dimension_semantics=("parallel", "parallel"),
            vmem_limit_bytes=48 * 1024 * 1024,   # above 16/32 MiB scoped defaults, < v7x 64 MiB
        ),
    )(img_p, qg_p, w_p, b_p)

    return None, pooled[:, :N, :P]


def _reference(image_embeds, query_embeds, w, b):
    B, N, _ = image_embeds.shape
    _, Q, _ = query_embeds.shape
    P = (Q - 3) // 3 + 1
    ice = jnp.einsum("bnh,hd->bnd", image_embeds, w) + b[0]
    ice = ice / (jnp.linalg.norm(ice, axis=-1, keepdims=True) + 1e-6)
    qn = query_embeds / jnp.linalg.norm(query_embeds, axis=-1, keepdims=True) + 1e-6
    sims = jnp.einsum("bnd,bqd->bnq", ice, qn)
    return jnp.max(sims[:, :, : P * 3].reshape(B, N, P, 3), axis=-1)


if __name__ == "__main__":
    B, N, H = 2, 16, 32      # batch, image patches, hidden_size
    Q, D = 9, 24             # num queries, query_dim (projection_dim)

    key = jax.random.PRNGKey(0)
    k1, k2, k3, k4 = jax.random.split(key, 4)
    image_embeds = jax.random.normal(k1, (B, N, H), dtype=jnp.float32)
    query_embeds = jax.random.normal(k2, (B, Q, D), dtype=jnp.float32)
    # dense0: Linear(H -> D); deterministic in-script init
    w = jax.random.normal(k3, (H, D), dtype=jnp.float32) / jnp.sqrt(H)
    b = jax.random.normal(k4, (1, D), dtype=jnp.float32) * 0.01

    none_out, pred_sims = owlvit_class_head(image_embeds, query_embeds, w, b)
    pred_sims = jax.block_until_ready(pred_sims)

    ref = _reference(image_embeds, query_embeds, w, b)
    assert none_out is None
    assert pred_sims.shape == (B, N, (Q - 3) // 3 + 1)
    assert jnp.allclose(pred_sims, ref, atol=1e-5, rtol=1e-5)
    print("KERNEL_OK")
</pallas_src>

<mosaic_0001>
module attributes {stable_mosaic.version = 11 : i64} {
  func.func @cls_head_kernel(%arg0: i32, %arg1: i32, %arg2: memref<1x16x128xf32, #tpu.memory_space<vmem>>, %arg3: memref<1x3x128x128xf32, #tpu.memory_space<vmem>>, %arg4: memref<128x128xf32, #tpu.memory_space<vmem>>, %arg5: memref<1x128xf32, #tpu.memory_space<vmem>>, %arg6: memref<1x16x128xf32, #tpu.memory_space<vmem>>) attributes {dimension_semantics = [#tpu.dimension_semantics<parallel>, #tpu.dimension_semantics<parallel>], iteration_bounds = array<i64: 2, 1>, scalar_prefetch = 0 : i64, scratch_operands = 0 : i64, tpu.core_type = #tpu.core_type<tc>, window_params = [{transform_indices = @transform_0, window_bounds = array<i64: 1, 16, 128>}, {transform_indices = @transform_1, window_bounds = array<i64: 1, 3, 128, 128>}, {pipeline_mode = #tpu.pipeline_mode<synchronous>, transform_indices = @transform_2, window_bounds = array<i64: 128, 128>}, {pipeline_mode = #tpu.pipeline_mode<synchronous>, transform_indices = @transform_3, window_bounds = array<i64: 1, 128>}, {transform_indices = @transform_4, window_bounds = array<i64: 1, 16, 128>}]} {
    %c0 = arith.constant 0 : index
    %c0_0 = arith.constant 0 : index
    %c0_1 = arith.constant 0 : index
    %0 = vector.load %arg2[%c0, %c0_0, %c0_1] : memref<1x16x128xf32, #tpu.memory_space<vmem>>, vector<1x16x128xf32>
    %1 = vector.shape_cast %0 : vector<1x16x128xf32> to vector<16x128xf32>
    %c0_2 = arith.constant 0 : index
    %c0_3 = arith.constant 0 : index
    %2 = vector.load %arg4[%c0_2, %c0_3] : memref<128x128xf32, #tpu.memory_space<vmem>>, vector<128x128xf32>
    %c0_4 = arith.constant 0 : index
    %c0_5 = arith.constant 0 : index
    %3 = vector.load %arg5[%c0_4, %c0_5] : memref<1x128xf32, #tpu.memory_space<vmem>>, vector<1x128xf32>
    %cst = arith.constant dense<0.000000e+00> : vector<16x128xf32>
    %4 = tpu.matmul %1, %2, %cst {dimension_numbers = #tpu.dot_dimension_numbers<[1], [0], [0], [1], [0, 0, 1, 1], [], []>} : vector<16x128xf32>, vector<128x128xf32>, vector<16x128xf32> -> vector<16x128xf32>
    %5 = vector.broadcast %3 : vector<1x128xf32> to vector<16x128xf32>
    %6 = arith.addf %4, %5 : vector<16x128xf32>
    %7 = arith.mulf %6, %6 : vector<16x128xf32>
    %cst_6 = arith.constant dense<0.000000e+00> : vector<16xf32>
    %8 = vector.multi_reduction <add>, %7, %cst_6 [1] : vector<16x128xf32> to vector<16xf32>
    %9 = vector.shape_cast %8 : vector<16xf32> to vector<16x1xf32>
    %10 = math.sqrt %9 : vector<16x1xf32>
    %cst_7 = arith.constant 9.99999997E-7 : f32
    %11 = vector.broadcast %cst_7 : f32 to vector<16x1xf32>
    %12 = arith.addf %10, %11 : vector<16x1xf32>
    %13 = tpu.reciprocal %12 : vector<16x1xf32> -> vector<16x1xf32>
    %14 = vector.broadcast %13 : vector<16x1xf32> to vector<16x128xf32>
    %15 = arith.mulf %6, %14 : vector<16x128xf32>
    %c0_8 = arith.constant 0 : index
    %c0_9 = arith.constant 0 : index
    %c0_10 = arith.constant 0 : index
    %c0_11 = arith.constant 0 : index
    %16 = vector.load %arg3[%c0_8, %c0_9, %c0_10, %c0_11] : memref<1x3x128x128xf32, #tpu.memory_space<vmem>>, vector<1x3x128x128xf32>
    %17 = vector.shape_cast %16 : vector<1x3x128x128xf32> to vector<3x128x128xf32>
    %18 = vector.extract_strided_slice %17 {offsets = [0, 0, 0], sizes = [1, 128, 128], strides = [1, 1, 1]} : vector<3x128x128xf32> to vector<1x128x128xf32>
    %19 = vector.shape_cast %18 : vector<1x128x128xf32> to vector<128x128xf32>
    %cst_12 = arith.constant dense<0.000000e+00> : vector<16x128xf32>
    %20 = tpu.matmul %15, %19, %cst_12 {dimension_numbers = #tpu.dot_dimension_numbers<[1], [1], [0], [0], [0, 0, 1, 0], [], []>} : vector<16x128xf32>, vector<128x128xf32>, vector<16x128xf32> -> vector<16x128xf32>
    %21 = vector.extract_strided_slice %17 {offsets = [1, 0, 0], sizes = [1, 128, 128], strides = [1, 1, 1]} : vector<3x128x128xf32> to vector<1x128x128xf32>
    %22 = vector.shape_cast %21 : vector<1x128x128xf32> to vector<128x128xf32>
    %cst_13 = arith.constant dense<0.000000e+00> : vector<16x128xf32>
    %23 = tpu.matmul %15, %22, %cst_13 {dimension_numbers = #tpu.dot_dimension_numbers<[1], [1], [0], [0], [0, 0, 1, 0], [], []>} : vector<16x128xf32>, vector<128x128xf32>, vector<16x128xf32> -> vector<16x128xf32>
    %24 = vector.extract_strided_slice %17 {offsets = [2, 0, 0], sizes = [1, 128, 128], strides = [1, 1, 1]} : vector<3x128x128xf32> to vector<1x128x128xf32>
    %25 = vector.shape_cast %24 : vector<1x128x128xf32> to vector<128x128xf32>
    %cst_14 = arith.constant dense<0.000000e+00> : vector<16x128xf32>
    %26 = tpu.matmul %15, %25, %cst_14 {dimension_numbers = #tpu.dot_dimension_numbers<[1], [1], [0], [0], [0, 0, 1, 0], [], []>} : vector<16x128xf32>, vector<128x128xf32>, vector<16x128xf32> -> vector<16x128xf32>
    %27 = arith.maximumf %20, %23 : vector<16x128xf32>
    %28 = arith.maximumf %27, %26 : vector<16x128xf32>
    %c0_15 = arith.constant 0 : index
    %c0_16 = arith.constant 0 : index
    %c0_17 = arith.constant 0 : index
    %29 = vector.load %arg6[%c0_15, %c0_16, %c0_17] : memref<1x16x128xf32, #tpu.memory_space<vmem>>, vector<1x16x128xf32>
    %30 = vector.shape_cast %29 : vector<1x16x128xf32> to vector<16x128xf32>
    %31 = vector.shape_cast %28 : vector<16x128xf32> to vector<1x16x128xf32>
    tpu.vector_store %arg6[%c0_15, %c0_16, %c0_17], %31 {strides = array<i32>} : memref<1x16x128xf32, #tpu.memory_space<vmem>>, vector<1x16x128xf32>,
    return
  }
  func.func @transform_0(%arg0: i32, %arg1: i32) -> (i32, i32, i32) {
    %c0_i32 = arith.constant 0 : i32
    %c0_i32_0 = arith.constant 0 : i32
    return %arg0, %arg1, %c0_i32 : i32, i32, i32
  }
  func.func @transform_1(%arg0: i32, %arg1: i32) -> (i32, i32, i32, i32) {
    %c0_i32 = arith.constant 0 : i32
    %c0_i32_0 = arith.constant 0 : i32
    %c0_i32_1 = arith.constant 0 : i32
    %c0_i32_2 = arith.constant 0 : i32
    return %arg0, %c0_i32, %c0_i32_0, %c0_i32_1 : i32, i32, i32, i32
  }
  func.func @transform_2(%arg0: i32, %arg1: i32) -> (i32, i32) {
    %c0_i32 = arith.constant 0 : i32
    %c0_i32_0 = arith.constant 0 : i32
    %c0_i32_1 = arith.constant 0 : i32
    return %c0_i32, %c0_i32_0 : i32, i32
  }
  func.func @transform_3(%arg0: i32, %arg1: i32) -> (i32, i32) {
    %c0_i32 = arith.constant 0 : i32
    %c0_i32_0 = arith.constant 0 : i32
    %c0_i32_1 = arith.constant 0 : i32
    return %c0_i32, %c0_i32_0 : i32, i32
  }
  func.func @transform_4(%arg0: i32, %arg1: i32) -> (i32, i32, i32) {
    %c0_i32 = arith.constant 0 : i32
    %c0_i32_0 = arith.constant 0 : i32
    return %arg0, %arg1, %c0_i32 : i32, i32, i32
  }
}

</mosaic_0001>

<bundles_post_ra>
// kernel: tpu_custom_call.1
= control target key start
LH: loop header
LB: loop body
LE: loop exit
PB: predicated region body
PF: predicated region fallthrough
CT: control target
= control target key end

     0   :  { %s1225_s0 = inlined_call_operand.hbm [shape: f32[2,16,128], index: 0, kind: input, shape index: {}]   ;;  %s1226_s1 = inlined_call_operand.hbm [shape: f32[2,3,128,128], index: 1, kind: input, shape index: {}]   ;;  %s1227_s2 = inlined_call_operand.hbm [shape: f32[128,128], index: 2, kind: input, shape index: {}]   ;;  %s1228_s3 = inlined_call_operand.vmem [shape: f32[1,128], index: 3, kind: input, shape index: {}]   ;;  %s1229_s4 = inlined_call_operand.hbm [shape: f32[2,16,128], index: 4, kind: output, shape index: {}]  }
   0x1   :  { %1238 = sst [smem:[#allocation18_spill]] %s1227_s2 }
   0x2   :  { %9 = vsyncpa [#allocation3], 0 }
   0x3   :  { %11 = vsyncpa [#allocation3 + $0x1], 0 }
   0x4   :  { %12 = vsyncpa [#allocation6], 0 }
   0x5   :  { %14 = vsyncpa [#allocation6 + $0x1], 0 }
   0x6   :  { %15 = vsyncpa [#allocation4], 0 }
   0x7   :  { %17 = vsyncpa [#allocation4 + $0x1], 0  ;;  %s989_s15 = smov 0   ;;  %s991_s16 = smov 0  }
   0x8   :  { %s993_s17 = smov 0   ;;  %s995_s18 = smov 0  }
   0x9   :  { %s997_s19 = smov 0   ;;  %s999_s20 = smov 0  }
   0xa LB: > { %1239 = sst [smem:[#allocation13_spill]] %s937_s15  ;;  %s1020_s21 = sadd.s32 4294967295, %s957_s20   ;;  %s957_s20 = sphi %s999_s20, %s23_s20   ;;  %s953_s19 = sphi %s997_s19, %s1260_s19   ;;  %s949_s18 = sphi %s995_s18, %s1259_s18   ;;  %s945_s17 = sphi %s993_s17, %s1255_s17   ;;  %s941_s16 = sphi %s991_s16, %s1258_s16   ;;  %s937_s15 = sphi %s989_s15, %s1257_s15  }
   0xb   : > { %1240 = sst [smem:[#allocation14_spill]] %s945_s17  ;;  %s664_s22 = sadd.s32 4294967294, %s957_s20  }
   0xc   : > { %p57_p0 = scmp.ne.s32.totalorder %s941_s16, %s937_s15  ;;  %p58_p1 = scmp.eq.s32.totalorder %s1020_s21, 0 }
   0xd   : > { %p151_p2 = scmp.eq.s32.totalorder %s1020_s21, 1  ;;  %p157_p3 = scmp.eq.s32.totalorder %s664_s22, 1 }
   0xe   : > { %p1029_p4 = por %p58_p1, %p57_p0  ;;  %p665_p5 = scmp.ge.s32.totalorder %s957_s20, 1 }
   0xf   : > { %p1034_p6 = por %p157_p3, %p57_p0  ;;  %p164_p7 = scmp.lt.s32.totalorder %s957_s20, 3 }
  0x10   : > { %s1244_s2 = sld [smem:[#allocation18_spill]]  ;;  %s959_s29 = smov [#allocation7]  }
  0x11   : > { %s1242_s24 = scalar_select %p1034_p6, 1, 0 }
  0x12   : > { %p1042_p8 = pnand %p665_p5, %p164_p7  ;;  %s177_s30 = sshll.u32 %s959_s29, 4  ;;  %s178_s30 = int_to_ptr.vmem [resolvable:$true] %s177_s30 }
  0x13   : > { %1243 = sst [smem:[#allocation15_spill]] %s1242_s24  ;;  %p667_p11 = scmp.ge.s32.totalorder %s957_s20, 2 }
  0x14   : > { %p696_p9 = pneg %p1042_p8  ;;  %s1230_s5 = smov 128  }
  0x15   : > { %s1232_s6 = smov 8   ;;  %s35_s7 = sadd.s32 1, %s953_s19 }
  0x16   : > { %s175_s27 = sshll.u32 %s1244_s2, 4  ;;  %p697_p10 = pnand %p696_p9, %p58_p1  ;;  %s176_s27 = int_to_ptr.hbm [resolvable:$true] %s175_s27 }
  0x17   : > { %p37_p12 = scmp.ge.s32.totalorder %s35_s7, 2  ;;  %s44_s8 = sadd.s32 1, %s945_s17 }
  0x18   : > { %699 = dma.hbm_to_vmem [thread:$0]  (!%p697_p10), %s176_s27, 2048, %s178_s30, [#allocation6], %s1230_s5, %s1230_s5, %s1232_s6  }
  0x19   : > { %p51_p13 = scmp.ne.s32.totalorder %s945_s17, %s941_s16  ;;  %p52_p0 = scmp.eq.s32.totalorder %s957_s20, 0 }
  0x1a   : > { %s1262_s7 = smov (%p37_p12, %s35_s7), 0  ;;  %p712_p7 = scmp.lt.s32.totalorder %s957_s20, 2 }
  0x1b   : > { %1246 = sst [smem:[#allocation16_spill]] %s1262_s7  ;;  %p1061_p3 = por %p52_p0, %p51_p13 }
  0x1c   : > { %p1067_p5 = por %p151_p2, %p51_p13  ;;  %s39_s11 = ssub.s32 %s953_s19, %s1262_s7 }
  0x1d   : > { %p42_p9 = scmp.eq.s32.totalorder %s39_s11, 0  ;;  %s194_s12 = sand.u32 1, %s945_s17  }
  0x1e   : > { %s668_s13 = sshll.u32 %s194_s12, 4  ;;  %s681_s22 = sshll.u32 %s953_s19, 4 }
  0x1f   : > { %s1076_s14 = scalar_select %p42_p9, %s945_s17, %s44_s8  }
  0x20   : > { %s205_s27 = scalar_lea.hbm %s1225_s0, %s681_s22  ;;  %s198_s29 = scalar_lea.vmem [#allocation2], %s668_s13 }
  0x21   : > { %1249 = sst [smem:[#allocation17_spill]] %s1076_s14  ;;  %s208_s30 = sshll.u32 %s198_s29, 4  ;;  %s209_s30 = int_to_ptr.vmem [resolvable:$true] %s208_s30 }
  0x22   : > { %s206_s5 = sshll.u32 %s205_s27, 4  ;;  %p701_p2 = pnand %p712_p7, %p1061_p3  ;;  %s207_s5 = int_to_ptr.hbm [resolvable:$true] %s206_s5 }
  0x23   : > { %s683_s6 = smul.u32 384, %s194_s12  ;;  %s218_s2 = sand.u32 1, %s957_s20  }
  0x24   : > { %s195_s11 = scalar_lea.sflag [#allocation3], %s194_s12  ;;  %s1250_s7 = smov 8  }
  0x25   : > { %s1251_s24 = smov 128   ;;  %s684_s8 = smul.u32 384, %s953_s19 }
  0x26   : > { %703 = dma.hbm_to_vmem [thread:$0]  (!%p701_p2), %s207_s5, 256, %s209_s30, %s195_s11, %s1251_s24, %s1251_s24, %s1250_s7  }
  0x27   : > { %s222_s14 = scalar_lea.vmem [#allocation5], %s683_s6  ;;  %s227_s13 = scalar_lea.hbm %s1226_s1, %s684_s8 }
  0x28   : > { %s230_s17 = sshll.u32 %s222_s14, 4  ;;  %s228_s22 = sshll.u32 %s227_s13, 4  ;;  %s231_s17 = int_to_ptr.vmem [resolvable:$true] %s230_s17  ;;  %s229_s22 = int_to_ptr.hbm [resolvable:$true] %s228_s22 }
  0x29   : > { %s219_s26 = scalar_lea.sflag [#allocation6], %s218_s2  ;;  %242 = sbr.rel (%p1042_p8) target bundleno = 521 (0x209), region = 36 }
  0x2a   : > { %706 = dma.hbm_to_vmem [thread:$0]  (!%p701_p2), %s229_s22, 6144, %s231_s17, %s219_s26, %s1251_s24, %s1251_s24, %s1250_s7  }
  0x2b   : > { %s1098_s5 = sand.u32 (!%p1042_p8), 1, %s941_s16  }
  0x2c   : > { %s673_s15 = sshll.u32 (!%p1042_p8), %s1098_s5, 4  ;;  %s245_s6 = scalar_lea.sflag (!%p1042_p8), [#allocation3], %s1098_s5 }
  0x2d   : > { %s1104_s9 = scalar_lea.vmem (!%p1042_p8), [#allocation2], %s673_s15 }
  0x2e   : > { %920 = dma.done.wait (%p1029_p4), %s245_s6, 256  }
  0x2f   : > { %922 = vsyncadd (%p1029_p4), %s245_s6, 4294967040  ;;  %s254_s2 = sand.u32 1, %s1020_s21   ;;  %s685_s17 = smul.u32 384, %s1098_s5 }
  0x30   : > { %s255_s24 = scalar_lea.sflag [#allocation6], %s254_s2 }
  0x31   : > { %s1112_s28 = scalar_lea.vmem [#allocation5], %s685_s17 }
  0x32   : > { %924 = dma.done.wait (%p1029_p4), %s255_s24, 6144  }
  0x33   : > { %926 = vsyncadd (%p1029_p4), %s255_s24, 4294961152 }
  0x34   : > { %928 = dma.done.wait (%p58_p1), [#allocation6], 2048  }
  0x35   : > { %930 = vsyncadd (%p58_p1), [#allocation6], 4294965248  ;;  %v313_v0 = vld [vmem:[#allocation7 + $0x78] sm:$0xff]  ;;  %v312_v1 = vld [vmem:[#allocation7 + $0x70] sm:$0xff]  ;;  %s682_s7 = sshll.u32 %s949_s18, 4  ;;  %s293_s29 = scalar_lea.vmem [#allocation8], %s673_s15 }
  0x36   : > { %318 = vmatpush.msra.mxu0 %v313_v0  ;;  %v311_v2 = vld [vmem:[#allocation7 + $0x68] sm:$0xff]  ;;  %v310_v3 = vld [vmem:[#allocation7 + $0x60] sm:$0xff]  ;;  %v309_v4 = vld [vmem:[#allocation7 + $0x58] sm:$0xff]  ;;  %s540_s27 = scalar_lea.hbm %s1229_s4, %s682_s7  ;;  %s541_s30 = sshll.u32 %s293_s29, 4  ;;  %s542_s30 = int_to_ptr.vmem [resolvable:$true] %s541_s30 }
  0x37   : > { %v308_v5 = vld [vmem:[#allocation7 + $0x50] sm:$0xff]  ;;  %v307_v6 = vld [vmem:[#allocation7 + $0x48] sm:$0xff]  ;;  %v306_v7 = vld [vmem:[#allocation7 + $0x40] sm:$0xff]  ;;  %s543_s11 = sshll.u32 %s540_s27, 4  ;;  %s527_s18 = scalar_lea.sflag [#allocation4], %s1098_s5  ;;  %s544_s11 = int_to_ptr.hbm [resolvable:$true] %s543_s11 }
  0x38   : > { %319 = vmatpush.msra.mxu0 %v312_v1  ;;  %v305_v8 = vld [vmem:[#allocation7 + $0x38] sm:$0xff]  ;;  %v304_v9 = vld [vmem:[#allocation7 + $0x30] sm:$0xff]  ;;  %v303_v10 = vld [vmem:[#allocation7 + $0x28] sm:$0xff]  ;;  %s881_s8 = sshra.s32 %s544_s11, 4  ;;  %s887_s26 = scalar_lea.hbm %s1229_s4, 32  ;;  %s882_s8 = int_to_ptr.hbm [resolvable:$true] %s881_s8 }
  0x39   : > { %v302_v11 = vld [vmem:[#allocation7 + $0x20] sm:$0xff]  ;;  %v301_v12 = vld [vmem:[#allocation7 + $0x18] sm:$0xff]  ;;  %v300_v13 = vld [vmem:[#allocation7 + $0x10] sm:$0xff]  ;;  %s883_s25 = scalar_lea.hbm %s882_s8, 16  ;;  %p888_p10 = scmp.lt.s32.totalorder %s882_s8, %s1229_s4 }
  0x3a   : > { %320 = vmatpush.msra.mxu0 %v311_v2  ;;  %v299_v14 = vld [vmem:[#allocation7 + $0x8] sm:$0xff]  ;;  %v298_v15 = vld [vmem:[#allocation7] sm:$0xff]  ;;  %v418_v18 = vld [vmem:[%s1112_s28 + $0x78] sm:$0xff]  ;;  %p884_p1 = scmp.ne.s32.totalorder %s882_s8, %s883_s25  ;;  %p889_p12 = scmp.lt.s32.totalorder %s887_s26, %s883_s25 }
  0x3b   : > { %v296_v16 = vld [vmem:[%s1104_s9] sm:$0xff]  ;;  %v297_v17 = vld [vmem:[%s1104_s9 + $0x8] sm:$0xff]  ;;  %451 = vmatpush.xpose.msra.mxu1 %v418_v18 }
  0x3c   : > { %321 = vmatpush.msra.mxu0 %v310_v3  ;;  %v434_v19 = vld [vmem:[%s1112_s28 + $0xf8] sm:$0xff]  ;;  %v417_v21 = vld [vmem:[%s1112_s28 + $0x70] sm:$0xff]  ;;  %v416_v24 = vld [vmem:[%s1112_s28 + $0x68] sm:$0xff]  ;;  %p885_p4 = pnand %p884_p1, %p1067_p5  ;;  %p890_p13 = por %p889_p12, %p888_p10 }
  0x3d   : > { %v450_v20 = vld [vmem:[%s1112_s28 + $0x178] sm:$0xff]  ;;  %474 = vmatpush.xpose.msra.mxu2 %v434_v19  ;;  %v433_v22 = vld [vmem:[%s1112_s28 + $0xf0] sm:$0xff]  ;;  %v432_v25 = vld [vmem:[%s1112_s28 + $0xe8] sm:$0xff] }
  0x3e   : > { %322 = vmatpush.msra.mxu0 %v309_v4  ;;  %497 = vmatpush.xpose.msra.mxu3 %v450_v20  ;;  %v449_v23 = vld [vmem:[%s1112_s28 + $0x170] sm:$0xff]  ;;  %v448_v26 = vld [vmem:[%s1112_s28 + $0x168] sm:$0xff]  ;;  %v415_v27 = vld [vmem:[%s1112_s28 + $0x60] sm:$0xff]  ;;  %p886_p8 = pneg %p885_p4 }
  0x3f   : > { %452 = vmatpush.xpose.msra.mxu1 %v417_v21  ;;  %v431_v28 = vld [vmem:[%s1112_s28 + $0xe0] sm:$0xff]  ;;  %v414_v30 = vld [vmem:[%s1112_s28 + $0x58] sm:$0xff]  ;;  %v413_v34 = vld [vmem:[%s1112_s28 + $0x50] sm:$0xff] }
  0x40   : > { %323 = vmatpush.msra.mxu0 %v308_v5  ;;  %v447_v29 = vld [vmem:[%s1112_s28 + $0x160] sm:$0xff]  ;;  %v430_v31 = vld [vmem:[%s1112_s28 + $0xd8] sm:$0xff]  ;;  %v429_v35 = vld [vmem:[%s1112_s28 + $0xd0] sm:$0xff]  ;;  %p891_p0 = pnand %p890_p13, %p886_p8 }
  0x41   : > { %475 = vmatpush.xpose.msra.mxu2 %v433_v22  ;;  %v446_v32 = vld [vmem:[%s1112_s28 + $0x158] sm:$0xff]  ;;  %v768_v33 = vld [vmem:[%s1228_s3] ss:$0 sm:$0xff]  ;;  %v445_v37 = vld [vmem:[%s1112_s28 + $0x150] sm:$0xff] }
  0x42   : > { %324 = vmatpush.msra.mxu0 %v307_v6  ;;  %498 = vmatpush.xpose.msra.mxu3 %v449_v23  ;;  %v412_v43 = vld [vmem:[%s1112_s28 + $0x48] sm:$0xff]  ;;  %v411_v46 = vld [vmem:[%s1112_s28 + $0x40] sm:$0xff]  ;;  %v410_v49 = vld [vmem:[%s1112_s28 + $0x38] sm:$0xff] }
  0x43   : > { %453 = vmatpush.xpose.msra.mxu1 %v416_v24  ;;  %v428_v44 = vld [vmem:[%s1112_s28 + $0xc8] sm:$0xff]  ;;  %v427_v47 = vld [vmem:[%s1112_s28 + $0xc0] sm:$0xff]  ;;  %v426_v50 = vld [vmem:[%s1112_s28 + $0xb8] sm:$0xff] }
  0x44   : > { %325 = vmatpush.msra.mxu0 %v306_v7  ;;  %v444_v45 = vld [vmem:[%s1112_s28 + $0x148] sm:$0xff]  ;;  %v443_v48 = vld [vmem:[%s1112_s28 + $0x140] sm:$0xff]  ;;  %v442_v51 = vld [vmem:[%s1112_s28 + $0x138] sm:$0xff] }
  0x45   : > { %476 = vmatpush.xpose.msra.mxu2 %v432_v25  ;;  %v409_v52 = vld [vmem:[%s1112_s28 + $0x30] sm:$0xff]  ;;  %v408_v55 = vld [vmem:[%s1112_s28 + $0x28] sm:$0xff]  ;;  %v407_v58 = vld [vmem:[%s1112_s28 + $0x20] sm:$0xff] }
  0x46   : > { %326 = vmatpush.msra.mxu0 %v305_v8  ;;  %499 = vmatpush.xpose.msra.mxu3 %v448_v26  ;;  %v425_v53 = vld [vmem:[%s1112_s28 + $0xb0] sm:$0xff]  ;;  %v424_v56 = vld [vmem:[%s1112_s28 + $0xa8] sm:$0xff]  ;;  %v423_v59 = vld [vmem:[%s1112_s28 + $0xa0] sm:$0xff] }
  0x47   : > { %454 = vmatpush.xpose.msra.mxu1 %v415_v27  ;;  %v441_v54 = vld [vmem:[%s1112_s28 + $0x130] sm:$0xff]  ;;  %v440_v57 = vld [vmem:[%s1112_s28 + $0x128] sm:$0xff]  ;;  %v439_v60 = vld [vmem:[%s1112_s28 + $0x120] sm:$0xff] }
  0x48   : > { %327 = vmatpush.msra.mxu0 %v304_v9  ;;  %v406_v61 = vld [vmem:[%s1112_s28 + $0x18] sm:$0xff]  ;;  %v405_v0 = vld [vmem:[%s1112_s28 + $0x10] sm:$0xff]  ;;  %v404_v4 = vld [vmem:[%s1112_s28 + $0x8] sm:$0xff] }
  0x49   : > { %477 = vmatpush.xpose.msra.mxu2 %v431_v28  ;;  %v422_v62 = vld [vmem:[%s1112_s28 + $0x98] sm:$0xff]  ;;  %v421_v1 = vld [vmem:[%s1112_s28 + $0x90] sm:$0xff]  ;;  %v420_v5 = vld [vmem:[%s1112_s28 + $0x88] sm:$0xff] }
  0x4a   : > { %328 = vmatpush.msra.mxu0 %v303_v10  ;;  %500 = vmatpush.xpose.msra.mxu3 %v447_v29  ;;  %v438_v63 = vld [vmem:[%s1112_s28 + $0x118] sm:$0xff]  ;;  %v437_v2 = vld [vmem:[%s1112_s28 + $0x110] sm:$0xff]  ;;  %v436_v6 = vld [vmem:[%s1112_s28 + $0x108] sm:$0xff] }
  0x4b   : > { %455 = vmatpush.xpose.msra.mxu1 %v414_v30  ;;  %v403_v7 = vld [vmem:[%s1112_s28] sm:$0xff] }
  0x4c   : > { %329 = vmatpush.msra.mxu0 %v302_v11  ;;  %v419_v8 = vld [vmem:[%s1112_s28 + $0x80] sm:$0xff] }
  0x4d   : > { %478 = vmatpush.xpose.msra.mxu2 %v430_v31  ;;  %v435_v9 = vld [vmem:[%s1112_s28 + $0x100] sm:$0xff] }
  0x4e   : > { %330 = vmatpush.msra.mxu0 %v301_v12  ;;  %501 = vmatpush.xpose.msra.mxu3 %v446_v32 }
  0x4f   : > { %456 = vmatpush.xpose.msra.mxu1 %v413_v34 }
  0x50   : > { %331 = vmatpush.msra.mxu0 %v300_v13 }
  0x51   : > { %479 = vmatpush.xpose.msra.mxu2 %v429_v35 }
  0x52   : > { %332 = vmatpush.msra.mxu0 %v299_v14  ;;  %502 = vmatpush.xpose.msra.mxu3 %v445_v37 }
  0x53   : > { %457 = vmatpush.xpose.msra.mxu1 %v412_v43 }
  0x54   : > { %333 = vmatpush.msra.mxu0 %v298_v15 }
  0x55   : > { %334 = vmatmul.f32.vlgmr.msra.gmra.mxu0 %v296_v16  ;;  %480 = vmatpush.xpose.msra.mxu2 %v428_v44 }
  0x56   : > { %503 = vmatpush.xpose.msra.mxu3 %v444_v45 }
  0x57   : > { %458 = vmatpush.xpose.msra.mxu1 %v411_v46 }
  0x59   : > { %481 = vmatpush.xpose.msra.mxu2 %v427_v47 }
  0x5a   : > { %504 = vmatpush.xpose.msra.mxu3 %v443_v48 }
  0x5b   : > { %459 = vmatpush.xpose.msra.mxu1 %v410_v49 }
  0x5d   : > { %337 = vmatmul.f32.gmra.mxu0 %v297_v17  ;;  %482 = vmatpush.xpose.msra.mxu2 %v426_v50 }
  0x5e   : > { %505 = vmatpush.xpose.msra.mxu3 %v442_v51 }
  0x5f   : > { %460 = vmatpush.xpose.msra.mxu1 %v409_v52 }
  0x61   : > { %483 = vmatpush.xpose.msra.mxu2 %v425_v53 }
  0x62   : > { %506 = vmatpush.xpose.msra.mxu3 %v441_v54 }
  0x63   : > { %461 = vmatpush.xpose.msra.mxu1 %v408_v55 }
  0x65   : > { %484 = vmatpush.xpose.msra.mxu2 %v424_v56 }
  0x66   : > { %507 = vmatpush.xpose.msra.mxu3 %v440_v57 }
  0x67   : > { %462 = vmatpush.xpose.msra.mxu1 %v407_v58 }
  0x69   : > { %485 = vmatpush.xpose.msra.mxu2 %v423_v59 }
  0x6a   : > { %508 = vmatpush.xpose.msra.mxu3 %v439_v60 }
  0x6b   : > { %463 = vmatpush.xpose.msra.mxu1 %v406_v61 }
  0x6d   : > { %486 = vmatpush.xpose.msra.mxu2 %v422_v62 }
  0x6e   : > { %509 = vmatpush.xpose.msra.mxu3 %v438_v63 }
  0x6f   : > { %464 = vmatpush.xpose.msra.mxu1 %v405_v0 }
  0x71   : > { %487 = vmatpush.xpose.msra.mxu2 %v421_v1 }
  0x72   : > { %510 = vmatpush.xpose.msra.mxu3 %v437_v2 }
  0x73   : > { %465 = vmatpush.xpose.msra.mxu1 %v404_v4 }
  0x75   : > { %488 = vmatpush.xpose.msra.mxu2 %v420_v5 }
  0x76   : > { %511 = vmatpush.xpose.msra.mxu3 %v436_v6 }
  0x77   : > { %466 = vmatpush.xpose.msra.mxu1 %v403_v7 }
  0x79   : > { %489 = vmatpush.xpose.msra.mxu2 %v419_v8 }
  0x7a   : > { %512 = vmatpush.xpose.msra.mxu3 %v435_v9 }
  0xd2   : > { %v335_v36 = vpop.f32.mrf.mxu0 }
  0xd3   : > { %v1145_v38 = vadd.f32 %v768_v33, %v335_v36 }
  0xd5   : > { %v341_v39 = vmul.f32 %v1145_v38, %v1145_v38 }
  0xd7   : > { %343 = vadd.xlane.f32.xlu0 %v341_v39 }
  0xda   : > { %v338_v40 = vpop.f32.mrf.mxu0 }
  0xdb   : > { %v1149_v41 = vadd.f32 %v768_v33, %v338_v40 }
  0xdd   : > { %v342_v42 = vmul.f32 %v1149_v41, %v1149_v41 }
  0xdf   : > { %345 = vadd.xlane.f32.xlu0 %v342_v42 }
 0x14a   : > { %v344_v3 = vpop.xlane.xlu0 %343 }
 0x14b   : > { %769 = vrsqrt.f32 %v344_v3  ;;  %vm354_vm0 = vcmp.eq.f32.partialorder %v344_v3, inf  ;;  %v357_v21 = vand.u32 2147483648, %v344_v3  ;;  %vm356_vm1 = vcmp.eq.f32.partialorder %v344_v3, 0.0 }
 0x151   : > { %v770_v10 = vpop.eup %769 }
 0x152   : > { %v348_v11 = vmul.f32 %v770_v10, %v344_v3  ;;  %v346_v12 = vpop.xlane.xlu0 %345 }
 0x153   : > { %771 = vrsqrt.f32 %v346_v12  ;;  %vm366_vm2 = vcmp.eq.f32.partialorder %v346_v12, inf  ;;  %v369_v29 = vand.u32 2147483648, %v346_v12  ;;  %vm368_vm3 = vcmp.eq.f32.partialorder %v346_v12, 0.0 }
 0x154   : > { %v349_v13 = vmul.f32 %v770_v10, %v348_v11 }
 0x156   : > { %v350_v14 = vmul.f32 0.5, %v349_v13 }
 0x158   : > { %v351_v15 = vsub.f32 1.5, %v350_v14 }
 0x159   : > { %v772_v16 = vpop.eup %771 }
 0x15a   : > { %v352_v17 = vmul.f32 %v770_v10, %v351_v15  ;;  %v360_v18 = vmul.f32 %v772_v16, %v346_v12 }
 0x15c   : > { %v353_v19 = vmul.f32 %v352_v17, %v344_v3  ;;  %v361_v20 = vmul.f32 %v772_v16, %v360_v18 }
 0x15e   : > { %v355_v22 = vsel %vm354_vm0, %v344_v3, %v353_v19  ;;  %v362_v23 = vmul.f32 0.5, %v361_v20 }
 0x15f   : > { %v358_v24 = vsel %vm356_vm1, %v357_v21, %v355_v22 }
 0x160   : > { %v371_v25 = vadd.f32 1e-06, %v358_v24  ;;  %v363_v26 = vsub.f32 1.5, %v362_v23 }
 0x162   : > { %773 = vrcp.f32 %v371_v25  ;;  %v364_v27 = vmul.f32 %v772_v16, %v363_v26  ;;  %v384_v36 = vand.u32 2147483648, %v371_v25  ;;  %v382_v39 = vand.u32 2147483647, %v371_v25 }
 0x163   : > { %vm378_vm5 = vweird.f32 %v371_v25 }
 0x164   : > { %v365_v28 = vmul.f32 %v364_v27, %v346_v12  ;;  %v385_v43 = vor.u32 1.1754944e-38, %v384_v36  ;;  %vm383_vm7 = vcmp.eq.f32.partialorder %v382_v39, 8.507059e+37 }
 0x166   : > { %v367_v30 = vsel %vm366_vm2, %v346_v12, %v365_v28 }
 0x167   : > { %v370_v31 = vsel %vm368_vm3, %v369_v29, %v367_v30 }
 0x168   : > { %v774_v32 = vpop.eup %773  ;;  %v372_v33 = vadd.f32 1e-06, %v370_v31 }
 0x169   : > { %v374_v34 = vmul.f32 %v774_v32, %v371_v25  ;;  %vm379_vm4 = vweird.f32 %v774_v32 }
 0x16a   : > { %775 = vrcp.f32 %v372_v33  ;;  %vm380_vm6 = vmor %vm378_vm5, %vm379_vm4  ;;  %v398_v49 = vand.u32 2147483648, %v372_v33  ;;  %v396_v51 = vand.u32 2147483647, %v372_v33  ;;  %vm392_vm9 = vweird.f32 %v372_v33 }
 0x16b   : > { %v375_v35 = vsub.f32 1.0, %v374_v34 }
 0x16c   : > { %v399_v53 = vor.u32 1.1754944e-38, %v398_v49  ;;  %vm397_vm11 = vcmp.eq.f32.partialorder %v396_v51, 8.507059e+37 }
 0x16d   : > { %v376_v37 = vmul.f32 %v774_v32, %v375_v35 }
 0x16f   : > { %v377_v40 = vadd.f32 %v774_v32, %v376_v37 }
 0x170   : > { %v776_v42 = vpop.eup %775 }
 0x171   : > { %v381_v44 = vsel %vm380_vm6, %v774_v32, %v377_v40  ;;  %v388_v45 = vmul.f32 %v776_v42, %v372_v33  ;;  %vm393_vm8 = vweird.f32 %v776_v42 }
 0x172   : > { %v386_v46 = vsel %vm383_vm7, %v385_v43, %v381_v44  ;;  %vm394_vm10 = vmor %vm392_vm9, %vm393_vm8 }
 0x173   : > { %v401_v47 = vmul.f32 %v386_v46, %v1145_v38  ;;  %v389_v48 = vsub.f32 1.0, %v388_v45 }
 0x175   : > { %467 = vmatmul.f32.vlgmr.msra.gmra.mxu1 %v401_v47  ;;  %490 = vmatmul.f32.vlgmr.msra.gmra.mxu2 %v401_v47  ;;  %v390_v50 = vmul.f32 %v776_v42, %v389_v48 }
 0x176   : > { %513 = vmatmul.f32.vlgmr.msra.gmra.mxu3 %v401_v47 }
 0x177   : > { %v391_v52 = vadd.f32 %v776_v42, %v390_v50 }
 0x179   : > { %v395_v54 = vsel %vm394_vm10, %v776_v42, %v391_v52 }
 0x17a   : > { %v400_v55 = vsel %vm397_vm11, %v399_v53, %v395_v54 }
 0x17b   : > { %v402_v56 = vmul.f32 %v400_v55, %v1149_v41 }
 0x17d   : > { %470 = vmatmul.f32.gmra.mxu1 %v402_v56  ;;  %493 = vmatmul.f32.gmra.mxu2 %v402_v56 }
 0x17e   : > { %516 = vmatmul.f32.gmra.mxu3 %v402_v56 }
 0x1f2   : > { %v468_v38 = vpop.f32.mrf.mxu1 }
 0x1f8   : > { %v491_v57 = vpop.f32.mrf.mxu2 }
 0x1f9   : > { %v520_v58 = vmax.f32 %v468_v38, %v491_v57  ;;  %v514_v59 = vpop.f32.mrf.mxu3 }
 0x1fa   : > { %v471_v41 = vpop.f32.mrf.mxu1 }
 0x1fb   : > { %v522_v60 = vmax.f32 %v520_v58, %v514_v59 }
 0x1fd   : > { %524 = vst [vmem:[%s293_s29] sm:$0xff] %v522_v60 }
 0x200   : > { %v494_v61 = vpop.f32.mrf.mxu2 }
 0x201   : > { %v521_v62 = vmax.f32 %v471_v41, %v494_v61  ;;  %v517_v63 = vpop.f32.mrf.mxu3 }
 0x203   : > { %v523_v0 = vmax.f32 %v521_v62, %v517_v63 }
 0x205   : > { %525 = vst [vmem:[%s293_s29 + $0x8] sm:$0xff] %v523_v0 }
 0x206   : > { %894 = shalt.err (!%p891_p0)
}
 0x207   : > { %s962_s5 = smov 128   ;;  %s963_s9 = smov 8  }
 0x208   : > { %694 = dma.vmem_to_hbm [thread:$0]  (%p1067_p5), %s542_s30, 256, %s544_s11, %s527_s18, %s962_s5, %s962_s5, %s963_s9  }
 0x209 PF: > { %s1252_s2 = sld [smem:[#allocation13_spill]]  ;;  %p708_p3 = pnand %p667_p11, %p1034_p6 }
 0x20b   : > { %p709_p7 = pneg %p708_p3 }
 0x20f   : > { %s558_s24 = sand.u32 1, %s1252_s2  }
 0x210   : > { %s559_s28 = scalar_lea.sflag [#allocation4], %s558_s24 }
 0x211   : > { %932 = dma.done.wait (%p709_p7), %s559_s28, 256  }
 0x212   : > { %934 = vsyncadd (%p709_p7), %s559_s28, 4294967040  ;;  %s23_s20 = sadd.s32 1, %s957_s20   ;;  %s1254_s21 = sld [smem:[#allocation14_spill]] }
 0x213   : > { %p20_p9 = scmp.ge.s32.totalorder %s23_s20, 4   ;;  %s1255_s17 = sld [smem:[#allocation17_spill]] }
 0x214   : > { %s1256_s10 = sld [smem:[#allocation16_spill]]  ;;  %s1257_s15 = smov %s941_s16 }
 0x215   : > { %s1259_s18 = smov %s953_s19 }
 0x216   :  { %22 = sbr.rel (!%p20_p9) target bundleno = 10 (0xa), region = 98 }
 0x218   : > { %s1258_s16 = smov %s1254_s21 }
 0x21a   : > { %s1260_s19 = smov %s1256_s10 }
 0x21b   :  { %565 = vsyncpa [#allocation3], 1 }
 0x21c   :  { %567 = vsyncpa [#allocation3 + $0x1], 1 }
 0x21d   :  { %568 = vsyncpa [#allocation6], 1 }
 0x21e   :  { %570 = vsyncpa [#allocation6 + $0x1], 1 }
 0x21f   :  { %571 = vsyncpa [#allocation4], 1 }
 0x220   :  { %573 = vsyncpa [#allocation4 + $0x1], 1 }

</bundles_post_ra>
